<compile_context>
chip_gen: v6e
topology: v6e:2x2x1
jax: 0.10.0
libtpu: 0.0.40
codegen_flags: <defaults>
</compile_context>

<pallas_src>
import jax
import jax.numpy as jnp
from jax.experimental import pallas as pl
from jax.experimental.pallas import tpu as pltpu

LANE = 128  # TPU lane width


def _round_up(n, m):
    return ((n + m - 1) // m) * m


def _lstm_fc_kernel(x_ref, wg_ref, bg_ref, gsel_ref, osel_ref, wfc_ref, bfc_ref, out_ref):
    """Fused single-step LSTM cell (zero initial state) + Linear head.

    x_ref:    (TB, D)       input features (cast to bf16 in-kernel)
    wg_ref:   (D, GW)       bf16 packed gate weights, lanes [i | g | o | 0]; the 0.5 pre-scale
                            of sigmoid(x)=0.5*tanh(0.5x)+0.5 is already folded into i/o columns
    bg_ref:   (1, GW)       f32 packed gate bias (b_ih + b_hh), same layout / pre-scale
    gsel_ref: (GW, GW)      f32 0/1 matrix moving the g lanes onto lanes [0,H)
    osel_ref: (GW, GW)      f32 0/1 matrix moving the o lanes onto lanes [0,H)
    wfc_ref:  (GW, OW)      f32 fc weights, only rows [0,H) / cols [0,O) nonzero
    bfc_ref:  (1, OW)       f32 fc bias, zero padded
    out_ref:  (TB, OW)      bf16 logits (lane-dense; real columns are [:O])
    """
    xb = x_ref[...].astype(wg_ref.dtype)

    # Packed gate pre-activations; the h0 @ W_hh term is zero (h0 == 0).
    gates = jnp.dot(xb, wg_ref[...], preferred_element_type=jnp.float32) + bg_ref[...]

    # Single EUP pass for every gate: tanh on g lanes, tanh-form sigmoid on i/o lanes.
    t = jnp.tanh(gates)
    st = 0.5 * t + 0.5                    # sigmoid(pre) on the i / o lanes

    # Align g and o onto the i lanes with constant selection matmuls (idle MXU, no lane slices).
    ga = jnp.dot(t, gsel_ref[...], preferred_element_type=jnp.float32)   # tanh(g)   -> [0,H), 0 else
    oa = jnp.dot(st, osel_ref[...], preferred_element_type=jnp.float32)  # sigmoid(o)-> [0,H), 0 else

    c = st * ga                           # sigmoid(i)*tanh(g) on [0,H)  (f*c0 term is zero)
    hf = oa * jnp.tanh(c)                 # hidden state on [0,H), exactly 0 elsewhere

    out = jnp.dot(hf, wfc_ref[...], preferred_element_type=jnp.float32) + bfc_ref[...]
    out_ref[...] = out.astype(out_ref.dtype)   # bf16 writeback (half the HBM bytes)


def prepare_params(w_ih, w_hh, b_ih, b_hh, w_fc, b_fc):
    """One-time parameter preformatting (do NOT call per forward pass).

    w_ih: (4H, D)   w_hh: (4H, H)   b_ih, b_hh: (4H,)   w_fc: (O, H)   b_fc: (O,)
    """
    del w_hh                                   # multiplies the zero initial hidden state
    four_h, d = w_ih.shape
    h = four_h // 4
    o = w_fc.shape[0]
    gw = _round_up(3 * h, LANE)                # packed gate width (i|g|o, zero padded)
    ow = _round_up(o, LANE)                    # lane-dense output width

    w_ih = jnp.asarray(w_ih, jnp.float32)
    bias = jnp.asarray(b_ih, jnp.float32) + jnp.asarray(b_hh, jnp.float32)

    # PyTorch gate order i|f|g|o; the forget gate is dead (c0 == 0) and is dropped.
    def gate(k):
        return w_ih[k * h:(k + 1) * h], bias[k * h:(k + 1) * h]
    wi, bi = gate(0)
    wg, bg = gate(2)
    wo, bo = gate(3)

    # Fold the 0.5 pre-scale of sigmoid(x) = 0.5*tanh(0.5*x)+0.5 into the i / o columns.
    w_cols = jnp.concatenate([0.5 * wi.T, wg.T, 0.5 * wo.T], axis=1)          # (D, 3H)
    b_cols = jnp.concatenate([0.5 * bi, bg, 0.5 * bo])                        # (3H,)
    w_gates = jnp.pad(w_cols, ((0, 0), (0, gw - 3 * h))).astype(jnp.bfloat16)
    b_gates = jnp.pad(b_cols, (0, gw - 3 * h)).reshape(1, gw).astype(jnp.float32)

    # Constant 0/1 selection matrices: sel[h*k + j, j] = 1 for j < h.
    r = jnp.arange(gw)
    g_sel = ((r[:, None] == r[None, :] + h) & (r[None, :] < h)).astype(jnp.float32)
    o_sel = ((r[:, None] == r[None, :] + 2 * h) & (r[None, :] < h)).astype(jnp.float32)

    # FC head kept in f32 (tiny) so the only low-precision step is the bf16 gate matmul / output.
    w_fc_pad = jnp.zeros((gw, ow), jnp.float32).at[:h, :o].set(
        jnp.asarray(w_fc, jnp.float32).T)
    b_fc_pad = jnp.pad(jnp.asarray(b_fc, jnp.float32), (0, ow - o)).reshape(1, ow)

    return {
        "w_gates": w_gates, "b_gates": b_gates, "g_sel": g_sel, "o_sel": o_sel,
        "w_fc": w_fc_pad, "b_fc": b_fc_pad,
        "input_dim": int(d), "hidden_dim": int(h), "output_dim": int(o),
        "gate_width": int(gw), "out_width": int(ow),
    }


def _choose_batch_tiling(b, d, gw, ow):
    """Padding-aware batch tiling: minimal ragged waste, >=2 steps for large B (v7x 2 TCs),
    ~2048-row tiles (v5e/v6e) with a VMEM-aware cap for large input_dim."""
    # Rough per-row VMEM footprint: f32 x row + bf16 out row + ~6 f32 full-width temporaries.
    bytes_per_row = 4 * d + 2 * ow + 24 * gw
    max_block = max(256, min(2048, (8 << 20) // bytes_per_row))
    max_block = _round_up(max_block, 8)
    min_grid = 2 if b > 512 else 1            # keep both v7x TensorCores busy for large batches
    grid = max(pl.cdiv(b, max_block), min_grid)
    if grid == 1:
        return b, 1                           # single full-extent block: no padding at all
    block_b = _round_up(pl.cdiv(b, grid), 8)
    return block_b, pl.cdiv(b, block_b)       # ragged last block handled by Pallas


def sentiment_classifier_forward(x, params):
    """Forward pass. x: (B, input_dim) -> logits (B, output_dim) float32."""
    b, d = x.shape
    assert d == params["input_dim"]
    gw, ow, o = params["gate_width"], params["out_width"], params["output_dim"]

    block_b, grid = _choose_batch_tiling(b, d, gw, ow)

    out = pl.pallas_call(
        _lstm_fc_kernel,
        out_shape=jax.ShapeDtypeStruct((b, ow), jnp.bfloat16),      # bf16 writeback
        grid=(grid,),
        in_specs=[
            pl.BlockSpec((block_b, d), lambda i: (i, 0)),           # x: batch-tiled (no wrapper pad/cast)
            pl.BlockSpec((d, gw), lambda i: (0, 0)),                # packed gate weights (VMEM resident)
            pl.BlockSpec((1, gw), lambda i: (0, 0)),                # packed gate bias
            pl.BlockSpec((gw, gw), lambda i: (0, 0)),               # g selection matrix
            pl.BlockSpec((gw, gw), lambda i: (0, 0)),               # o selection matrix
            pl.BlockSpec((gw, ow), lambda i: (0, 0)),               # fc weights
            pl.BlockSpec((1, ow), lambda i: (0, 0)),                # fc bias
        ],
        out_specs=pl.BlockSpec((block_b, ow), lambda i: (i, 0)),    # lane-dense output block
        compiler_params=pltpu.CompilerParams(
            dimension_semantics=("parallel",)),                     # batch axis shards across TCs
    )(x, params["w_gates"], params["b_gates"], params["g_sel"], params["o_sel"],
      params["w_fc"], params["b_fc"])

    return out[:, :o].astype(jnp.float32)


def _reference_forward(x, w_ih, w_hh, b_ih, b_hh, w_fc, b_fc):
    """Pure-JAX f32 reference of the PyTorch forward (sanity check)."""
    h_dim = w_hh.shape[1]
    a = x @ w_ih.T + b_ih + b_hh              # h0 == 0
    i = jax.nn.sigmoid(a[:, 0 * h_dim:1 * h_dim])
    g = jnp.tanh(a[:, 2 * h_dim:3 * h_dim])
    o = jax.nn.sigmoid(a[:, 3 * h_dim:4 * h_dim])
    c = i * g
    h = o * jnp.tanh(c)
    return h @ w_fc.T + b_fc


if __name__ == "__main__":
    # Small shapes consistent with the module.
    B, input_dim, hidden_dim, output_dim = 8, 16, 32, 4

    key = jax.random.PRNGKey(0)
    ks = jax.random.split(key, 7)
    x = jax.random.normal(ks[0], (B, input_dim), jnp.float32)

    scale = 0.1
    w_ih = scale * jax.random.normal(ks[1], (4 * hidden_dim, input_dim), jnp.float32)
    w_hh = scale * jax.random.normal(ks[2], (4 * hidden_dim, hidden_dim), jnp.float32)
    b_ih = scale * jax.random.normal(ks[3], (4 * hidden_dim,), jnp.float32)
    b_hh = scale * jax.random.normal(ks[4], (4 * hidden_dim,), jnp.float32)
    w_fc = scale * jax.random.normal(ks[5], (output_dim, hidden_dim), jnp.float32)
    b_fc = scale * jax.random.normal(ks[6], (output_dim,), jnp.float32)

    # Preformat parameters once (outside the forward path).
    params = prepare_params(w_ih, w_hh, b_ih, b_hh, w_fc, b_fc)

    fwd = jax.jit(lambda xx: sentiment_classifier_forward(xx, params))
    out = jax.block_until_ready(fwd(x))

    ref = _reference_forward(x, w_ih, w_hh, b_ih, b_hh, w_fc, b_fc)
    assert out.shape == (B, output_dim)
    max_err = float(jnp.max(jnp.abs(out - ref)))
    # bf16 gate matmul inputs + bf16 output store vs. an all-f32 reference.
    assert max_err < 3e-2, f"max abs err {max_err}"

    print("KERNEL_OK")
</pallas_src>

<mosaic_0001>
module attributes {stable_mosaic.version = 11 : i64} {
  func.func @_lstm_fc_kernel(%arg0: i32, %arg1: memref<8x16xf32, #tpu.memory_space<vmem>>, %arg2: memref<16x128xbf16, #tpu.memory_space<vmem>>, %arg3: memref<1x128xf32, #tpu.memory_space<vmem>>, %arg4: memref<128x128xf32, #tpu.memory_space<vmem>>, %arg5: memref<128x128xf32, #tpu.memory_space<vmem>>, %arg6: memref<128x128xf32, #tpu.memory_space<vmem>>, %arg7: memref<1x128xf32, #tpu.memory_space<vmem>>, %arg8: memref<8x128xbf16, #tpu.memory_space<vmem>>) attributes {dimension_semantics = [#tpu.dimension_semantics<parallel>], iteration_bounds = array<i64: 1>, scalar_prefetch = 0 : i64, scratch_operands = 0 : i64, tpu.core_type = #tpu.core_type<tc>, window_params = [{transform_indices = @transform_0, window_bounds = array<i64: 8, 16>}, {pipeline_mode = #tpu.pipeline_mode<synchronous>, transform_indices = @transform_1, window_bounds = array<i64: 16, 128>}, {pipeline_mode = #tpu.pipeline_mode<synchronous>, transform_indices = @transform_2, window_bounds = array<i64: 1, 128>}, {pipeline_mode = #tpu.pipeline_mode<synchronous>, transform_indices = @transform_3, window_bounds = array<i64: 128, 128>}, {pipeline_mode = #tpu.pipeline_mode<synchronous>, transform_indices = @transform_4, window_bounds = array<i64: 128, 128>}, {pipeline_mode = #tpu.pipeline_mode<synchronous>, transform_indices = @transform_5, window_bounds = array<i64: 128, 128>}, {pipeline_mode = #tpu.pipeline_mode<synchronous>, transform_indices = @transform_6, window_bounds = array<i64: 1, 128>}, {transform_indices = @transform_7, window_bounds = array<i64: 8, 128>}]} {
    %c0 = arith.constant 0 : index
    %c0_0 = arith.constant 0 : index
    %0 = vector.load %arg1[%c0, %c0_0] : memref<8x16xf32, #tpu.memory_space<vmem>>, vector<8x16xf32>
    %1 = arith.truncf %0 : vector<8x16xf32> to vector<8x16xbf16>
    %c0_1 = arith.constant 0 : index
    %c0_2 = arith.constant 0 : index
    %2 = vector.load %arg2[%c0_1, %c0_2] : memref<16x128xbf16, #tpu.memory_space<vmem>>, vector<16x128xbf16>
    %cst = arith.constant dense<0.000000e+00> : vector<8x128xf32>
    %3 = tpu.matmul %1, %2, %cst {dimension_numbers = #tpu.dot_dimension_numbers<[1], [0], [0], [1], [0, 0, 1, 1], [], []>} : vector<8x16xbf16>, vector<16x128xbf16>, vector<8x128xf32> -> vector<8x128xf32>
    %c0_3 = arith.constant 0 : index
    %c0_4 = arith.constant 0 : index
    %4 = vector.load %arg3[%c0_3, %c0_4] : memref<1x128xf32, #tpu.memory_space<vmem>>, vector<1x128xf32>
    %5 = vector.broadcast %4 : vector<1x128xf32> to vector<8x128xf32>
    %6 = arith.addf %3, %5 : vector<8x128xf32>
    %7 = math.tanh %6 : vector<8x128xf32>
    %cst_5 = arith.constant 5.000000e-01 : f32
    %8 = vector.broadcast %cst_5 : f32 to vector<8x128xf32>
    %9 = arith.mulf %8, %7 : vector<8x128xf32>
    %cst_6 = arith.constant 5.000000e-01 : f32
    %10 = vector.broadcast %cst_6 : f32 to vector<8x128xf32>
    %11 = arith.addf %9, %10 : vector<8x128xf32>
    %c0_7 = arith.constant 0 : index
    %c0_8 = arith.constant 0 : index
    %12 = vector.load %arg4[%c0_7, %c0_8] : memref<128x128xf32, #tpu.memory_space<vmem>>, vector<128x128xf32>
    %cst_9 = arith.constant dense<0.000000e+00> : vector<8x128xf32>
    %13 = tpu.matmul %7, %12, %cst_9 {dimension_numbers = #tpu.dot_dimension_numbers<[1], [0], [0], [1], [0, 0, 1, 1], [], []>} : vector<8x128xf32>, vector<128x128xf32>, vector<8x128xf32> -> vector<8x128xf32>
    %c0_10 = arith.constant 0 : index
    %c0_11 = arith.constant 0 : index
    %14 = vector.load %arg5[%c0_10, %c0_11] : memref<128x128xf32, #tpu.memory_space<vmem>>, vector<128x128xf32>
    %cst_12 = arith.constant dense<0.000000e+00> : vector<8x128xf32>
    %15 = tpu.matmul %11, %14, %cst_12 {dimension_numbers = #tpu.dot_dimension_numbers<[1], [0], [0], [1], [0, 0, 1, 1], [], []>} : vector<8x128xf32>, vector<128x128xf32>, vector<8x128xf32> -> vector<8x128xf32>
    %16 = arith.mulf %11, %13 : vector<8x128xf32>
    %17 = math.tanh %16 : vector<8x128xf32>
    %18 = arith.mulf %15, %17 : vector<8x128xf32>
    %c0_13 = arith.constant 0 : index
    %c0_14 = arith.constant 0 : index
    %19 = vector.load %arg6[%c0_13, %c0_14] : memref<128x128xf32, #tpu.memory_space<vmem>>, vector<128x128xf32>
    %cst_15 = arith.constant dense<0.000000e+00> : vector<8x128xf32>
    %20 = tpu.matmul %18, %19, %cst_15 {dimension_numbers = #tpu.dot_dimension_numbers<[1], [0], [0], [1], [0, 0, 1, 1], [], []>} : vector<8x128xf32>, vector<128x128xf32>, vector<8x128xf32> -> vector<8x128xf32>
    %c0_16 = arith.constant 0 : index
    %c0_17 = arith.constant 0 : index
    %21 = vector.load %arg7[%c0_16, %c0_17] : memref<1x128xf32, #tpu.memory_space<vmem>>, vector<1x128xf32>
    %22 = vector.broadcast %21 : vector<1x128xf32> to vector<8x128xf32>
    %23 = arith.addf %20, %22 : vector<8x128xf32>
    %24 = arith.truncf %23 : vector<8x128xf32> to vector<8x128xbf16>
    %c0_18 = arith.constant 0 : index
    %c0_19 = arith.constant 0 : index
    %25 = vector.load %arg8[%c0_18, %c0_19] : memref<8x128xbf16, #tpu.memory_space<vmem>>, vector<8x128xbf16>
    tpu.vector_store %arg8[%c0_18, %c0_19], %24 {strides = array<i32>} : memref<8x128xbf16, #tpu.memory_space<vmem>>, vector<8x128xbf16>,
    return
  }
  func.func @transform_0(%arg0: i32) -> (i32, i32) {
    %c0_i32 = arith.constant 0 : i32
    %c0_i32_0 = arith.constant 0 : i32
    return %arg0, %c0_i32 : i32, i32
  }
  func.func @transform_1(%arg0: i32) -> (i32, i32) {
    %c0_i32 = arith.constant 0 : i32
    %c0_i32_0 = arith.constant 0 : i32
    %c0_i32_1 = arith.constant 0 : i32
    return %c0_i32, %c0_i32_0 : i32, i32
  }
  func.func @transform_2(%arg0: i32) -> (i32, i32) {
    %c0_i32 = arith.constant 0 : i32
    %c0_i32_0 = arith.constant 0 : i32
    %c0_i32_1 = arith.constant 0 : i32
    return %c0_i32, %c0_i32_0 : i32, i32
  }
  func.func @transform_3(%arg0: i32) -> (i32, i32) {
    %c0_i32 = arith.constant 0 : i32
    %c0_i32_0 = arith.constant 0 : i32
    %c0_i32_1 = arith.constant 0 : i32
    return %c0_i32, %c0_i32_0 : i32, i32
  }
  func.func @transform_4(%arg0: i32) -> (i32, i32) {
    %c0_i32 = arith.constant 0 : i32
    %c0_i32_0 = arith.constant 0 : i32
    %c0_i32_1 = arith.constant 0 : i32
    return %c0_i32, %c0_i32_0 : i32, i32
  }
  func.func @transform_5(%arg0: i32) -> (i32, i32) {
    %c0_i32 = arith.constant 0 : i32
    %c0_i32_0 = arith.constant 0 : i32
    %c0_i32_1 = arith.constant 0 : i32
    return %c0_i32, %c0_i32_0 : i32, i32
  }
  func.func @transform_6(%arg0: i32) -> (i32, i32) {
    %c0_i32 = arith.constant 0 : i32
    %c0_i32_0 = arith.constant 0 : i32
    %c0_i32_1 = arith.constant 0 : i32
    return %c0_i32, %c0_i32_0 : i32, i32
  }
  func.func @transform_7(%arg0: i32) -> (i32, i32) {
    %c0_i32 = arith.constant 0 : i32
    %c0_i32_0 = arith.constant 0 : i32
    return %arg0, %c0_i32 : i32, i32
  }
}

</mosaic_0001>

<bundles_post_ra>
// kernel: _lambda_.1
= control target key start
LH: loop header
LB: loop body
LE: loop exit
PB: predicated region body
PF: predicated region fallthrough
CT: control target
= control target key end

     0   :  { %12 = vsyncpa [#allocation3], 0  ;;  %s865_s0 = inlined_call_operand.hbm [shape: f32[8,16], index: 0, kind: input, shape index: {}]   ;;  %s866_s1 = inlined_call_operand.hbm [shape: bf16[16,128], index: 1, kind: input, shape index: {}]   ;;  %s867_s2 = inlined_call_operand.vmem [shape: f32[1,128], index: 2, kind: input, shape index: {}]   ;;  %s868_s3 = inlined_call_operand.hbm [shape: f32[128,128], index: 3, kind: input, shape index: {}]   ;;  %s869_s4 = inlined_call_operand.hbm [shape: f32[128,128], index: 4, kind: input, shape index: {}]   ;;  %s870_s5 = inlined_call_operand.hbm [shape: f32[128,128], index: 5, kind: input, shape index: {}]   ;;  %s871_s6 = inlined_call_operand.vmem [shape: f32[1,128], index: 6, kind: input, shape index: {}]   ;;  %s872_s7 = inlined_call_operand.vmem [shape: bf16[8,128], index: 7, kind: output, shape index: {}]  }
   0x1   :  { %13 = vsyncpa [#allocation5], 0 }
   0x2   :  { %14 = vsyncpa [#allocation8], 0  ;;  %s724_s24 = smov [#allocation4]  }
   0x3   :  { %s30_s25 = sshll.u32 %s724_s24, 4  ;;  %s31_s25 = int_to_ptr.vmem [resolvable:$true] %s30_s25 }
   0x4   :  { %s626_s26 = scalar_lea.vmem %s31_s25, 128  ;;  %p631_p1 = scmp.lt.s32.totalorder %s31_s25, %s31_s25 }
   0x5   :  { %p627_p0 = scmp.ne.s32.totalorder %s31_s25, %s626_s26  ;;  %p632_p2 = scmp.lt.s32.totalorder %s626_s26, %s626_s26 }
   0x7   :  { %p633_p3 = por %p632_p2, %p631_p1 }
   0x9   :  { %p634_p4 = pnand %p633_p3, %p627_p0 }
   0xb   :  { %637 = shalt.err (!%p634_p4)
}
   0xc   :  { %s725_s27 = smov 64   ;;  %s726_s28 = smov 4  }
   0xd   :  { %36 = dma.hbm_to_vmem [thread:$0]  %s866_s1, 128, %s31_s25, [#allocation5], %s725_s27, %s725_s27, %s726_s28  }
   0xe   :  { %s727_s8 = smov [#allocation7]   ;;  %s728_s10 = smov [#allocation2]  }
   0xf   :  { %s56_s9 = sshll.u32 %s727_s8, 4  ;;  %s21_s11 = sshll.u32 %s728_s10, 4  ;;  %s57_s9 = int_to_ptr.vmem [resolvable:$true] %s56_s9  ;;  %s22_s11 = int_to_ptr.vmem [resolvable:$true] %s21_s11 }
  0x10   :  { %s646_s12 = scalar_lea.vmem %s57_s9, 2048  ;;  %p651_p6 = scmp.lt.s32.totalorder %s57_s9, %s57_s9 }
  0x11   :  { %p647_p5 = scmp.ne.s32.totalorder %s57_s9, %s646_s12  ;;  %p652_p7 = scmp.lt.s32.totalorder %s646_s12, %s646_s12 }
  0x13   :  { %p653_p8 = por %p652_p7, %p651_p6 }
  0x15   :  { %p654_p9 = pnand %p653_p8, %p647_p5 }
  0x17   :  { %657 = shalt.err (!%p654_p9)
}
  0x18   :  { %s729_s13 = smov 128   ;;  %s730_s14 = smov 8  }
  0x19   :  { %62 = dma.hbm_to_vmem [thread:$0]  %s869_s4, 2048, %s57_s9, [#allocation8], %s729_s13, %s729_s13, %s730_s14  }
  0x1a   :  { %s666_s1 = scalar_lea.vmem %s22_s11, 128  ;;  %p671_p11 = scmp.lt.s32.totalorder %s22_s11, %s22_s11 }
  0x1b   :  { %p667_p10 = scmp.ne.s32.totalorder %s22_s11, %s666_s1  ;;  %p672_p12 = scmp.lt.s32.totalorder %s666_s1, %s666_s1 }
  0x1d   :  { %p673_p13 = por %p672_p12, %p671_p11 }
  0x1f   :  { %p674_p0 = pnand %p673_p13, %p667_p10 }
  0x21   :  { %677 = shalt.err (!%p674_p0)
}
  0x22   :  { %24 = dma.hbm_to_vmem [thread:$0]  %s865_s0, 128, %s22_s11, [#allocation3]  }
  0x23   :  { %s731_s19 = smov [#allocation6]   ;;  %s732_s21 = smov [#allocation9]  }
  0x24   :  { %s44_s20 = sshll.u32 %s731_s19, 4  ;;  %s68_s22 = sshll.u32 %s732_s21, 4  ;;  %s45_s20 = int_to_ptr.vmem [resolvable:$true] %s44_s20  ;;  %s69_s22 = int_to_ptr.vmem [resolvable:$true] %s68_s22 }
  0x25   :  { %s686_s23 = scalar_lea.vmem %s45_s20, 2048  ;;  %p691_p2 = scmp.lt.s32.totalorder %s45_s20, %s45_s20 }
  0x26   :  { %p687_p1 = scmp.ne.s32.totalorder %s45_s20, %s686_s23  ;;  %p692_p3 = scmp.lt.s32.totalorder %s686_s23, %s686_s23 }
  0x28   :  { %p693_p4 = por %p692_p3, %p691_p2 }
  0x2a   :  { %p694_p5 = pnand %p693_p4, %p687_p1 }
  0x2c   :  { %697 = shalt.err (!%p694_p5)
}
  0x2d   :  { %50 = dma.hbm_to_vmem [thread:$0]  %s868_s3, 2048, %s45_s20, [#allocation5], %s729_s13, %s729_s13, %s730_s14  }
  0x2e   :  { %s706_s0 = scalar_lea.vmem %s69_s22, 2048  ;;  %p711_p7 = scmp.lt.s32.totalorder %s69_s22, %s69_s22 }
  0x2f   :  { %p707_p6 = scmp.ne.s32.totalorder %s69_s22, %s706_s0  ;;  %p712_p8 = scmp.lt.s32.totalorder %s706_s0, %s706_s0 }
  0x31   :  { %p713_p9 = por %p712_p8, %p711_p7 }
  0x33   :  { %p714_p10 = pnand %p713_p9, %p707_p6 }
  0x35   :  { %717 = shalt.err (!%p714_p10)
}
  0x36   :  { %74 = dma.hbm_to_vmem [thread:$0]  %s870_s5, 2048, %s69_s22, [#allocation8], %s729_s13, %s729_s13, %s730_s14  }
  0x37   :  { %718 = dma.done.wait [#allocation3], 128  }
  0x38   :  { %719 = vsyncadd [#allocation3], 4294967168 }
  0x39   :  { %720 = dma.done.wait [#allocation5], 2176  }
  0x3a   :  { %721 = vsyncadd [#allocation5], 4294965120 }
  0x3b   :  { %722 = dma.done.wait [#allocation8], 4096  }
  0x3c   :  { %723 = vsyncadd [#allocation8], 4294963200  ;;  %v733_v0 = vmov 0.0   ;;  %vm734_vm0 = vmmov 0   ;;  %v613_v1 = vld [vmem:[#allocation4] sm:$0xff]   ;;  %v93_v2 = vld [vmem:[#allocation2] sm:$0xff] }
  0x3d   :  { %491 = vmatprep.subr.bf16.mxu0 %v733_v0  ;;  %493 = vmatprep.mubr.msk.bf16.mxu0 %vm734_vm0, %v733_v0  ;;  %v172_v3 = vld [vmem:[#allocation6 + $0x78] sm:$0xff]  ;;  %v171_v4 = vld [vmem:[#allocation6 + $0x70] sm:$0xff]  ;;  %v94_v5 = vpack.c.bf16 %v93_v2, %v93_v2  ;;  %vm110_vm1 = vcmask 130048   ;;  %v170_v6 = vld [vmem:[#allocation6 + $0x68] sm:$0xff] }
  0x3e   :  { %497 = vmatprep.subr.mxu1 %v733_v0  ;;  %529 = vmatprep.mubr.msk.f32.mxu1 %vm734_vm0, %v733_v0  ;;  %v258_v7 = vld [vmem:[#allocation7 + $0x78] sm:$0xff]  ;;  %v169_v8 = vld [vmem:[#allocation6 + $0x60] sm:$0xff]  ;;  %v257_v9 = vld [vmem:[#allocation7 + $0x70] sm:$0xff] }
  0x3f   :  { %492 = vmatpush3.bf16.msra.mxu0 %v613_v1  ;;  %498 = vmatpush3.msra.mxu1 %v172_v3  ;;  %v168_v10 = vld [vmem:[#allocation6 + $0x58] sm:$0xff]  ;;  %v256_v11 = vld [vmem:[#allocation7 + $0x68] sm:$0xff]  ;;  %v167_v12 = vld [vmem:[#allocation6 + $0x50] sm:$0xff] }
  0x40   :  { %499 = vmatprep.subr.mxu1 %v733_v0  ;;  %532 = vmatprep.subr.mxu0 %v733_v0  ;;  %v255_v13 = vld [vmem:[#allocation7 + $0x60] sm:$0xff]  ;;  %v166_v14 = vld [vmem:[#allocation6 + $0x48] sm:$0xff]  ;;  %v254_v15 = vld [vmem:[#allocation7 + $0x58] sm:$0xff] }
  0x41   :  { %500 = vmatpush3.msra.mxu1 %v171_v4  ;;  %v165_v16 = vld [vmem:[#allocation6 + $0x40] sm:$0xff]  ;;  %v253_v17 = vld [vmem:[#allocation7 + $0x50] sm:$0xff]  ;;  %v164_v18 = vld [vmem:[#allocation6 + $0x38] sm:$0xff] }
  0x42   :  { %494 = vmatmul.mubr.msk.bf16.vlgmr.msra.gmra.mxu0 %vm110_vm1, %v94_v5  ;;  %501 = vmatprep.subr.mxu1 %v733_v0  ;;  %v252_v19 = vld [vmem:[#allocation7 + $0x48] sm:$0xff]  ;;  %v163_v20 = vld [vmem:[#allocation6 + $0x30] sm:$0xff]  ;;  %v251_v21 = vld [vmem:[#allocation7 + $0x40] sm:$0xff] }
  0x43   :  { %502 = vmatpush3.msra.mxu1 %v170_v6  ;;  %533 = vmatpush3.msra.mxu0 %v258_v7  ;;  %v162_v22 = vld [vmem:[#allocation6 + $0x28] sm:$0xff]  ;;  %v250_v23 = vld [vmem:[#allocation7 + $0x38] sm:$0xff]  ;;  %v161_v24 = vld [vmem:[#allocation6 + $0x20] sm:$0xff] }
  0x44   :  { %503 = vmatprep.subr.mxu1 %v733_v0  ;;  %534 = vmatprep.subr.mxu0 %v733_v0  ;;  %v249_v25 = vld [vmem:[#allocation7 + $0x30] sm:$0xff]  ;;  %v160_v26 = vld [vmem:[#allocation6 + $0x18] sm:$0xff]  ;;  %v248_v27 = vld [vmem:[#allocation7 + $0x28] sm:$0xff] }
  0x45   :  { %504 = vmatpush3.msra.mxu1 %v169_v8  ;;  %535 = vmatpush3.msra.mxu0 %v257_v9  ;;  %v159_v28 = vld [vmem:[#allocation6 + $0x10] sm:$0xff]  ;;  %v247_v29 = vld [vmem:[#allocation7 + $0x20] sm:$0xff]  ;;  %v158_v30 = vld [vmem:[#allocation6 + $0x8] sm:$0xff] }
  0x46   :  { %505 = vmatprep.subr.mxu1 %v733_v0  ;;  %536 = vmatprep.subr.mxu0 %v733_v0  ;;  %v246_v31 = vld [vmem:[#allocation7 + $0x18] sm:$0xff]  ;;  %v157_v32 = vld [vmem:[#allocation6] sm:$0xff]  ;;  %v245_v33 = vld [vmem:[#allocation7 + $0x10] sm:$0xff] }
  0x47   :  { %506 = vmatpush3.msra.mxu1 %v168_v10  ;;  %537 = vmatpush3.msra.mxu0 %v256_v11  ;;  %v244_v34 = vld [vmem:[#allocation7 + $0x8] sm:$0xff]  ;;  %v243_v35 = vld [vmem:[#allocation7] sm:$0xff]  ;;  %v434_v36 = vld [vmem:[%s867_s2] ss:$0 sm:$0xff] }
  0x48   :  { %507 = vmatprep.subr.mxu1 %v733_v0  ;;  %538 = vmatprep.subr.mxu0 %v733_v0  ;;  %v347_v42 = vld [vmem:[#allocation9 + $0x78] sm:$0xff]  ;;  %v346_v45 = vld [vmem:[#allocation9 + $0x70] sm:$0xff]  ;;  %v345_v47 = vld [vmem:[#allocation9 + $0x68] sm:$0xff] }
  0x49   :  { %508 = vmatpush3.msra.mxu1 %v167_v12  ;;  %539 = vmatpush3.msra.mxu0 %v255_v13  ;;  %v344_v48 = vld [vmem:[#allocation9 + $0x60] sm:$0xff]  ;;  %v343_v49 = vld [vmem:[#allocation9 + $0x58] sm:$0xff]  ;;  %v342_v50 = vld [vmem:[#allocation9 + $0x50] sm:$0xff] }
  0x4a   :  { %509 = vmatprep.subr.mxu1 %v733_v0  ;;  %540 = vmatprep.subr.mxu0 %v733_v0  ;;  %v341_v51 = vld [vmem:[#allocation9 + $0x48] sm:$0xff]  ;;  %v340_v52 = vld [vmem:[#allocation9 + $0x40] sm:$0xff]  ;;  %v339_v53 = vld [vmem:[#allocation9 + $0x38] sm:$0xff] }
  0x4b   :  { %510 = vmatpush3.msra.mxu1 %v166_v14  ;;  %541 = vmatpush3.msra.mxu0 %v254_v15  ;;  %v338_v54 = vld [vmem:[#allocation9 + $0x30] sm:$0xff]  ;;  %v337_v55 = vld [vmem:[#allocation9 + $0x28] sm:$0xff]  ;;  %v336_v56 = vld [vmem:[#allocation9 + $0x20] sm:$0xff] }
  0x4c   :  { %511 = vmatprep.subr.mxu1 %v733_v0  ;;  %542 = vmatprep.subr.mxu0 %v733_v0  ;;  %v335_v57 = vld [vmem:[#allocation9 + $0x18] sm:$0xff]  ;;  %v334_v58 = vld [vmem:[#allocation9 + $0x10] sm:$0xff]  ;;  %v333_v59 = vld [vmem:[#allocation9 + $0x8] sm:$0xff] }
  0x4d   :  { %564 = vmatprep.mubr.msk.f32.mxu0 %vm734_vm0, %v733_v0  ;;  %512 = vmatpush3.msra.mxu1 %v165_v16  ;;  %v332_v60 = vld [vmem:[#allocation9] sm:$0xff]  ;;  %v437_v5 = vld [vmem:[%s871_s6] ss:$0 sm:$0xff] }
  0x4e   :  { %543 = vmatpush3.msra.mxu0 %v253_v17  ;;  %513 = vmatprep.subr.mxu1 %v733_v0 }
  0x4f   :  { %544 = vmatprep.subr.mxu0 %v733_v0  ;;  %514 = vmatpush3.msra.mxu1 %v164_v18 }
  0x50   :  { %545 = vmatpush3.msra.mxu0 %v252_v19  ;;  %515 = vmatprep.subr.mxu1 %v733_v0 }
  0x51   :  { %546 = vmatprep.subr.mxu0 %v733_v0  ;;  %516 = vmatpush3.msra.mxu1 %v163_v20 }
  0x52   :  { %547 = vmatpush3.msra.mxu0 %v251_v21  ;;  %517 = vmatprep.subr.mxu1 %v733_v0 }
  0x53   :  { %548 = vmatprep.subr.mxu0 %v733_v0  ;;  %518 = vmatpush3.msra.mxu1 %v162_v22 }
  0x54   :  { %549 = vmatpush3.msra.mxu0 %v250_v23  ;;  %519 = vmatprep.subr.mxu1 %v733_v0 }
  0x55   :  { %550 = vmatprep.subr.mxu0 %v733_v0  ;;  %520 = vmatpush3.msra.mxu1 %v161_v24 }
  0x56   :  { %551 = vmatpush3.msra.mxu0 %v249_v25  ;;  %521 = vmatprep.subr.mxu1 %v733_v0 }
  0x57   :  { %552 = vmatprep.subr.mxu0 %v733_v0  ;;  %522 = vmatpush3.msra.mxu1 %v160_v26 }
  0x58   :  { %553 = vmatpush3.msra.mxu0 %v248_v27  ;;  %523 = vmatprep.subr.mxu1 %v733_v0 }
  0x59   :  { %554 = vmatprep.subr.mxu0 %v733_v0  ;;  %524 = vmatpush3.msra.mxu1 %v159_v28 }
  0x5a   :  { %555 = vmatpush3.msra.mxu0 %v247_v29  ;;  %525 = vmatprep.subr.mxu1 %v733_v0 }
  0x5b   :  { %556 = vmatprep.subr.mxu0 %v733_v0  ;;  %526 = vmatpush3.msra.mxu1 %v158_v30 }
  0x5c   :  { %557 = vmatpush3.msra.mxu0 %v246_v31  ;;  %527 = vmatprep.subr.mxu1 %v733_v0 }
  0x5d   :  { %558 = vmatprep.subr.mxu0 %v733_v0  ;;  %528 = vmatpush3.msra.mxu1 %v157_v32 }
  0x5e   :  { %559 = vmatpush3.msra.mxu0 %v245_v33  ;;  %567 = vmatprep.subr.mxu1 %v733_v0 }
  0x5f   :  { %560 = vmatprep.subr.mxu0 %v733_v0 }
  0x60   :  { %561 = vmatpush3.msra.mxu0 %v244_v34 }
  0x61   :  { %562 = vmatprep.subr.mxu0 %v733_v0 }
  0x62   :  { %563 = vmatpush3.msra.mxu0 %v243_v35 }
 0x102   :  { %v148_v37 = vpop.f32.mrf.mxu0 }
 0x103   :  { %v149_v38 = vadd.f32 %v434_v36, %v148_v37 }
 0x104   :  { %v495_v39 = vpop.f32.mrf.mxu0 }
 0x105   :  { %614 = vtanh.f32 %v149_v38 }
 0x106   :  { %v151_v40 = vpop.f32.mrf.mxu0 }
 0x108   :  { %v496_v41 = vpop.f32.mrf.mxu0 }
 0x112   :  { %v615_v43 = vpop.eup %614 }
 0x113   :  { %530 = vmatmul.mubr.f32.vlgmr.msra.gmra.mxu1 %v615_v43  ;;  %v155_v44 = vmul.f32 0.5, %v615_v43 }
 0x114   :  { %568 = vmatpush3.msra.mxu1 %v347_v42  ;;  %599 = vmatprep.mubr.msk.f32.mxu1 %vm734_vm0, %v733_v0 }
 0x115   :  { %v156_v46 = vadd.f32 0.5, %v155_v44  ;;  %569 = vmatprep.subr.mxu1 %v733_v0 }
 0x116   :  { %570 = vmatpush3.msra.mxu1 %v346_v45 }
 0x117   :  { %565 = vmatmul.mubr.f32.vlgmr.msra.gmra.mxu0 %v156_v46  ;;  %571 = vmatprep.subr.mxu1 %v733_v0 }
 0x118   :  { %572 = vmatpush3.msra.mxu1 %v345_v47 }
 0x119   :  { %573 = vmatprep.subr.mxu1 %v733_v0 }
 0x11a   :  { %574 = vmatpush3.msra.mxu1 %v344_v48 }
 0x11b   :  { %575 = vmatprep.subr.mxu1 %v733_v0 }
 0x11c   :  { %576 = vmatpush3.msra.mxu1 %v343_v49 }
 0x11d   :  { %577 = vmatprep.subr.mxu1 %v733_v0 }
 0x11e   :  { %578 = vmatpush3.msra.mxu1 %v342_v50 }
 0x11f   :  { %579 = vmatprep.subr.mxu1 %v733_v0 }
 0x120   :  { %580 = vmatpush3.msra.mxu1 %v341_v51 }
 0x121   :  { %581 = vmatprep.subr.mxu1 %v733_v0 }
 0x122   :  { %582 = vmatpush3.msra.mxu1 %v340_v52 }
 0x123   :  { %583 = vmatprep.subr.mxu1 %v733_v0 }
 0x124   :  { %584 = vmatpush3.msra.mxu1 %v339_v53 }
 0x125   :  { %585 = vmatprep.subr.mxu1 %v733_v0 }
 0x126   :  { %586 = vmatpush3.msra.mxu1 %v338_v54 }
 0x127   :  { %587 = vmatprep.subr.mxu1 %v733_v0 }
 0x128   :  { %588 = vmatpush3.msra.mxu1 %v337_v55 }
 0x129   :  { %589 = vmatprep.subr.mxu1 %v733_v0 }
 0x12a   :  { %590 = vmatpush3.msra.mxu1 %v336_v56 }
 0x12b   :  { %591 = vmatprep.subr.mxu1 %v733_v0 }
 0x12c   :  { %592 = vmatpush3.msra.mxu1 %v335_v57 }
 0x12d   :  { %593 = vmatprep.subr.mxu1 %v733_v0 }
 0x12e   :  { %594 = vmatpush3.msra.mxu1 %v334_v58 }
 0x12f   :  { %595 = vmatprep.subr.mxu1 %v733_v0 }
 0x130   :  { %596 = vmatpush3.msra.mxu1 %v333_v59 }
 0x131   :  { %597 = vmatprep.subr.mxu1 %v733_v0 }
 0x132   :  { %598 = vmatpush3.msra.mxu1 %v332_v60 }
 0x1d3   :  { %v239_v61 = vpop.f32.mrf.mxu1 }
 0x1d4   :  { %v329_v62 = vmul.f32 %v239_v61, %v156_v46 }
 0x1d5   :  { %v531_v63 = vpop.f32.mrf.mxu1 }
 0x1d6   :  { %616 = vtanh.f32 %v329_v62 }
 0x1d7   :  { %v325_v1 = vpop.f32.mrf.mxu0 }
 0x1d9   :  { %v566_v2 = vpop.f32.mrf.mxu0 }
 0x1e3   :  { %v617_v3 = vpop.eup %616 }
 0x1e4   :  { %v331_v4 = vmul.f32 %v617_v3, %v325_v1 }
 0x1e6   :  { %600 = vmatmul.mubr.f32.vlgmr.msra.gmra.mxu1 %v331_v4 }
 0x2a6   :  { %v421_v6 = vpop.f32.mrf.mxu1 }
 0x2a7   :  { %v422_v7 = vadd.f32 %v437_v5, %v421_v6 }
 0x2a8   :  { %v601_v8 = vpop.f32.mrf.mxu1 }
 0x2a9   :  { %v425_v9 = vpack.c.bf16 %v422_v7, %v422_v7 }
 0x2ab   :  { %426 = vst [vmem:[%s872_s7] sm:$0xf] %v425_v9 }
 0x2ac   :  { %431 = vsyncpa [#allocation3], 1 }
 0x2ad   :  { %432 = vsyncpa [#allocation5], 1 }
 0x2ae   :  { %433 = vsyncpa [#allocation8], 1 }

</bundles_post_ra>
